<compile_context>
chip_gen: v6e
topology: v6e:2x2x1
jax: 0.10.0
libtpu: 0.0.40
codegen_flags: <defaults>
</compile_context>

<pallas_src>
import functools
import math

import jax
import jax.numpy as jnp
from jax.experimental import pallas as pl
from jax.experimental.pallas import tpu as pltpu

LANE = 128          # lane-pad logits so the writeback is one unmasked lane-dense store
NEG_BIG = -1e30     # pad-lane bias: exp() underflows to 0 -> never affects the softmax (f32)


def rnn_fused_kernel(x_ref, w1x_ref, w1h_ref, b1_ref, w2_ref, b2_ref,
                     out_ref, hfin_ref, ho_ref, *, T, B, H):
    """Single grid step == the whole sequence.

    x_ref   : (T*B, I)      all timesteps, VMEM-resident
    w1x_ref : (I, H+O)      x-rows of the stacked [i2h | i2o] weight
    w1h_ref : (H, H+O)      h-rows of the stacked [i2h | i2o] weight
    b1_ref  : (1, H+O)
    w2_ref  : (H+O, 128)    o2o weight, lane-padded
    b2_ref  : (1, 128)      o2o bias, pad lanes = -1e30
    out_ref : (T*B, 128)    log-probs (lane-padded)
    hfin_ref: (B, H)        final hidden state
    ho_ref  : (T*B, H+O)    VMEM scratch: xp, then cat(h_t, o1_t) per step
    """
    # ---- Prologue (hoisted off the recurrence): input projection for ALL timesteps.
    # One batched (T*B, I) @ (I, H+O) matmul; b1 broadcast emitted exactly once.
    ho_ref[...] = (jnp.dot(x_ref[...], w1x_ref[...],
                           preferred_element_type=jnp.float32) + b1_ref[...])

    # ---- Serial recurrence: only h_{t-1} @ W1_h remains on the critical path.
    # T is small & static here, so a Python loop fully unrolls at trace time with
    # static sublane-aligned slices (B == 8).
    # TODO(synk): for long sequences, switch to lax.fori_loop(..., unroll=U) with a
    #             chunked (U-steps-per-grid-iteration) grid to bound VMEM / live ranges.
    h = jnp.zeros((B, H), jnp.float32)
    for t in range(T):
        rows = pl.ds(t * B, B)
        ho_t = ho_ref[rows, :] + jnp.dot(h, w1h_ref[...],
                                         preferred_element_type=jnp.float32)
        ho_ref[rows, :] = ho_t            # stash cat(h_t, o1_t) for the epilogue
        h = ho_t[:, :H]
    hfin_ref[...] = h

    # ---- Epilogue (off the serial path): o2o + log-softmax as ONE batched pass.
    # dropout(p=0.1) is identity in eval mode.
    # TODO(synk): training-mode dropout (pltpu.prng_random_bits mask + 1/(1-p) scaling).
    o2 = (jnp.dot(ho_ref[...], w2_ref[...],
                  preferred_element_type=jnp.float32) + b2_ref[...])
    m = jnp.max(o2, axis=1, keepdims=True)
    z = o2 - m
    lse = jnp.log(jnp.sum(jnp.exp(z), axis=1, keepdims=True))
    out_ref[...] = z - lse                # single (T*B, 128) lane-dense store


def rnn_forward(x_seq, params):
    """Run the whole sequence in one fused kernel.
    x_seq: (T, B, I).  Returns (log_probs (T, B, O), final hidden (B, H))."""
    T, B, I = x_seq.shape
    H = params["hidden_size"]
    O = params["output_size"]
    w1x, w1h, b1, w2, b2 = (params[k] for k in ("w1x", "w1h", "b1", "w2", "b2"))

    x2d = x_seq.reshape(T * B, I)   # layout plumbing outside the kernel (free)

    kernel = functools.partial(rnn_fused_kernel, T=T, B=B, H=H)

    out_pad, h_final = pl.pallas_call(
        kernel,
        out_shape=(
            jax.ShapeDtypeStruct((T * B, LANE), jnp.float32),
            jax.ShapeDtypeStruct((B, H), jnp.float32),
        ),
        grid=(1,),
        in_specs=[
            pl.BlockSpec((T * B, I), lambda i: (0, 0)),     # all timesteps VMEM-resident
            pl.BlockSpec(w1x.shape, lambda i: (0, 0)),      # weights VMEM-resident
            pl.BlockSpec(w1h.shape, lambda i: (0, 0)),
            pl.BlockSpec(b1.shape, lambda i: (0, 0)),
            pl.BlockSpec(w2.shape, lambda i: (0, 0)),
            pl.BlockSpec(b2.shape, lambda i: (0, 0)),
        ],
        out_specs=(
            pl.BlockSpec((T * B, LANE), lambda i: (0, 0)),  # one lane-dense logits slab
            pl.BlockSpec((B, H), lambda i: (0, 0)),
        ),
        scratch_shapes=[pltpu.VMEM((T * B, H + O), jnp.float32)],
        compiler_params=pltpu.CompilerParams(
            # single sequential grid step (the recurrence is serial)
            dimension_semantics=("arbitrary",),
        ),
    )(x2d, w1x, w1h, b1, w2, b2)

    out = out_pad[:, :O].reshape(T, B, O)
    return out, h_final


def init_params(key, input_size, hidden_size, output_size, n_categories=0):
    """Deterministic init mimicking nn.Linear: U(-1/sqrt(fan_in), 1/sqrt(fan_in)).
    Weights stored (in_features, out_features); i2h/i2o are stacked column-wise and
    then split by rows into an x-part and an h-part (no per-step concat in the kernel);
    o2o is lane-padded to 128 output columns."""
    def linear(key, fan_in, fan_out):
        kw, kb = jax.random.split(key)
        bound = 1.0 / math.sqrt(fan_in)
        w = jax.random.uniform(kw, (fan_in, fan_out), jnp.float32, -bound, bound)
        b = jax.random.uniform(kb, (1, fan_out), jnp.float32, -bound, bound)
        return w, b

    k1, k2, k3 = jax.random.split(key, 3)
    cih = n_categories + input_size + hidden_size

    w_i2h, b_i2h = linear(k1, cih, hidden_size)     # rows: [cat | input | hidden]
    w_i2o, b_i2o = linear(k2, cih, output_size)
    w_o2o, b_o2o = linear(k3, hidden_size + output_size, output_size)

    # n_categories == 0 -> the category row-block is empty; drop it.
    w_i2h = w_i2h[n_categories:]
    w_i2o = w_i2o[n_categories:]

    # Stack i2h | i2o column-wise, then split rows into x-part and h-part:
    #   x @ w1x + h @ w1h + b1 = [ h_new | o1 ]
    w1 = jnp.concatenate([w_i2h, w_i2o], axis=1)                       # (I+H, H+O)
    w1x = w1[:input_size]                                              # (I,   H+O)
    w1h = w1[input_size:]                                              # (H,   H+O)
    b1 = jnp.concatenate([b_i2h, b_i2o], axis=1)                       # (1,   H+O)

    # o2o, lane-padded: zero weight columns + -1e30 bias on the pad lanes.
    pad = LANE - output_size
    w2 = jnp.pad(w_o2o, ((0, 0), (0, pad)))                            # (H+O, 128)
    b2 = jnp.concatenate([b_o2o, jnp.full((1, pad), NEG_BIG, jnp.float32)], axis=1)

    return {
        "w1x": w1x, "w1h": w1h, "b1": b1, "w2": w2, "b2": b2,
        "hidden_size": hidden_size, "output_size": output_size,
        # unstacked copies for the pure-JAX reference
        "ref": {"w_i2h": w_i2h, "b_i2h": b_i2h,
                "w_i2o": w_i2o, "b_i2o": b_i2o,
                "w_o2o": w_o2o, "b_o2o": b_o2o},
    }


def rnn_seq_ref(x_seq, params):
    """Pure-JAX reference: exactly the PyTorch per-step math, scanned over time."""
    r = params["ref"]
    H = params["hidden_size"]
    B = x_seq.shape[1]

    def step(h, x):
        inp = jnp.concatenate([x, h], axis=1)                  # cat(category, input, hidden)
        h_new = inp @ r["w_i2h"] + r["b_i2h"]
        o1 = inp @ r["w_i2o"] + r["b_i2o"]
        o2 = jnp.concatenate([h_new, o1], axis=1) @ r["w_o2o"] + r["b_o2o"]
        return h_new, jax.nn.log_softmax(o2, axis=1)           # dropout = identity (eval)

    h0 = jnp.zeros((B, H), jnp.float32)
    h_final, outs = jax.lax.scan(step, h0, x_seq)
    return outs, h_final


if __name__ == "__main__":
    input_size, hidden_size, output_size = 16, 32, 16
    batch, seq_len = 8, 8        # batch=8 fills all 8 vreg sublanes

    key = jax.random.PRNGKey(0)
    kp, kx = jax.random.split(key)

    params = init_params(kp, input_size, hidden_size, output_size)
    x_seq = jax.random.normal(kx, (seq_len, batch, input_size), jnp.float32)

    out, h_final = rnn_forward(x_seq, params)
    jax.block_until_ready((out, h_final))

    out_ref, h_ref = rnn_seq_ref(x_seq, params)
    assert out.shape == (seq_len, batch, output_size)
    assert h_final.shape == (batch, hidden_size)
    # split-x/h matmuls change summation order vs. the reference's 48-deep concat dot
    assert jnp.allclose(out, out_ref, atol=1e-4), "log-softmax output mismatch"
    assert jnp.allclose(h_final, h_ref, atol=1e-4), "final hidden state mismatch"

    print("KERNEL_OK")
</pallas_src>

<mosaic_0001>
module attributes {stable_mosaic.version = 11 : i64} {
  func.func @rnn_fused_kernel(%arg0: i32, %arg1: memref<64x16xf32, #tpu.memory_space<vmem>>, %arg2: memref<16x48xf32, #tpu.memory_space<vmem>>, %arg3: memref<32x48xf32, #tpu.memory_space<vmem>>, %arg4: memref<1x48xf32, #tpu.memory_space<vmem>>, %arg5: memref<48x128xf32, #tpu.memory_space<vmem>>, %arg6: memref<1x128xf32, #tpu.memory_space<vmem>>, %arg7: memref<64x128xf32, #tpu.memory_space<vmem>>, %arg8: memref<8x32xf32, #tpu.memory_space<vmem>>, %arg9: memref<64x48xf32, #tpu.memory_space<vmem>>) attributes {dimension_semantics = [#tpu.dimension_semantics<arbitrary>], iteration_bounds = array<i64: 1>, scalar_prefetch = 0 : i64, scratch_operands = 1 : i64, tpu.core_type = #tpu.core_type<tc>, window_params = [{pipeline_mode = #tpu.pipeline_mode<synchronous>, transform_indices = @transform_0, window_bounds = array<i64: 64, 16>}, {pipeline_mode = #tpu.pipeline_mode<synchronous>, transform_indices = @transform_1, window_bounds = array<i64: 16, 48>}, {pipeline_mode = #tpu.pipeline_mode<synchronous>, transform_indices = @transform_2, window_bounds = array<i64: 32, 48>}, {pipeline_mode = #tpu.pipeline_mode<synchronous>, transform_indices = @transform_3, window_bounds = array<i64: 1, 48>}, {pipeline_mode = #tpu.pipeline_mode<synchronous>, transform_indices = @transform_4, window_bounds = array<i64: 48, 128>}, {pipeline_mode = #tpu.pipeline_mode<synchronous>, transform_indices = @transform_5, window_bounds = array<i64: 1, 128>}, {pipeline_mode = #tpu.pipeline_mode<synchronous>, transform_indices = @transform_6, window_bounds = array<i64: 64, 128>}, {pipeline_mode = #tpu.pipeline_mode<synchronous>, transform_indices = @transform_7, window_bounds = array<i64: 8, 32>}]} {
    %c0 = arith.constant 0 : index
    %c0_0 = arith.constant 0 : index
    %0 = vector.load %arg1[%c0, %c0_0] : memref<64x16xf32, #tpu.memory_space<vmem>>, vector<64x16xf32>
    %c0_1 = arith.constant 0 : index
    %c0_2 = arith.constant 0 : index
    %1 = vector.load %arg2[%c0_1, %c0_2] : memref<16x48xf32, #tpu.memory_space<vmem>>, vector<16x48xf32>
    %cst = arith.constant dense<0.000000e+00> : vector<64x48xf32>
    %2 = tpu.matmul %0, %1, %cst {dimension_numbers = #tpu.dot_dimension_numbers<[1], [0], [0], [1], [0, 0, 1, 1], [], []>} : vector<64x16xf32>, vector<16x48xf32>, vector<64x48xf32> -> vector<64x48xf32>
    %c0_3 = arith.constant 0 : index
    %c0_4 = arith.constant 0 : index
    %3 = vector.load %arg4[%c0_3, %c0_4] : memref<1x48xf32, #tpu.memory_space<vmem>>, vector<1x48xf32>
    %4 = vector.broadcast %3 : vector<1x48xf32> to vector<64x48xf32>
    %5 = arith.addf %2, %4 : vector<64x48xf32>
    %c0_5 = arith.constant 0 : index
    %c0_6 = arith.constant 0 : index
    %6 = vector.load %arg9[%c0_5, %c0_6] : memref<64x48xf32, #tpu.memory_space<vmem>>, vector<64x48xf32>
    tpu.vector_store %arg9[%c0_5, %c0_6], %5 {strides = array<i32>} : memref<64x48xf32, #tpu.memory_space<vmem>>, vector<64x48xf32>,
    %cst_7 = arith.constant 0.000000e+00 : f32
    %7 = vector.broadcast %cst_7 : f32 to vector<8x32xf32>
    %c0_8 = arith.constant 0 : index
    %c0_9 = arith.constant 0 : index
    %8 = vector.load %arg9[%c0_8, %c0_9] : memref<64x48xf32, #tpu.memory_space<vmem>>, vector<8x48xf32>
    %c0_10 = arith.constant 0 : index
    %c0_11 = arith.constant 0 : index
    %9 = vector.load %arg3[%c0_10, %c0_11] : memref<32x48xf32, #tpu.memory_space<vmem>>, vector<32x48xf32>
    %cst_12 = arith.constant dense<0.000000e+00> : vector<8x48xf32>
    %10 = tpu.matmul %7, %9, %cst_12 {dimension_numbers = #tpu.dot_dimension_numbers<[1], [0], [0], [1], [0, 0, 1, 1], [], []>} : vector<8x32xf32>, vector<32x48xf32>, vector<8x48xf32> -> vector<8x48xf32>
    %11 = arith.addf %8, %10 : vector<8x48xf32>
    %c0_13 = arith.constant 0 : index
    %c0_14 = arith.constant 0 : index
    %12 = vector.load %arg9[%c0_13, %c0_14] : memref<64x48xf32, #tpu.memory_space<vmem>>, vector<8x48xf32>
    tpu.vector_store %arg9[%c0_13, %c0_14], %11 {strides = array<i32>} : memref<64x48xf32, #tpu.memory_space<vmem>>, vector<8x48xf32>,
    %13 = vector.extract_strided_slice %11 {offsets = [0, 0], sizes = [8, 32], strides = [1, 1]} : vector<8x48xf32> to vector<8x32xf32>
    %c8 = arith.constant 8 : index
    %c0_15 = arith.constant 0 : index
    %14 = vector.load %arg9[%c8, %c0_15] : memref<64x48xf32, #tpu.memory_space<vmem>>, vector<8x48xf32>
    %c0_16 = arith.constant 0 : index
    %c0_17 = arith.constant 0 : index
    %15 = vector.load %arg3[%c0_16, %c0_17] : memref<32x48xf32, #tpu.memory_space<vmem>>, vector<32x48xf32>
    %cst_18 = arith.constant dense<0.000000e+00> : vector<8x48xf32>
    %16 = tpu.matmul %13, %15, %cst_18 {dimension_numbers = #tpu.dot_dimension_numbers<[1], [0], [0], [1], [0, 0, 1, 1], [], []>} : vector<8x32xf32>, vector<32x48xf32>, vector<8x48xf32> -> vector<8x48xf32>
    %17 = arith.addf %14, %16 : vector<8x48xf32>
    %c8_19 = arith.constant 8 : index
    %c0_20 = arith.constant 0 : index
    %18 = vector.load %arg9[%c8_19, %c0_20] : memref<64x48xf32, #tpu.memory_space<vmem>>, vector<8x48xf32>
    tpu.vector_store %arg9[%c8_19, %c0_20], %17 {strides = array<i32>} : memref<64x48xf32, #tpu.memory_space<vmem>>, vector<8x48xf32>,
    %19 = vector.extract_strided_slice %17 {offsets = [0, 0], sizes = [8, 32], strides = [1, 1]} : vector<8x48xf32> to vector<8x32xf32>
    %c16 = arith.constant 16 : index
    %c0_21 = arith.constant 0 : index
    %20 = vector.load %arg9[%c16, %c0_21] : memref<64x48xf32, #tpu.memory_space<vmem>>, vector<8x48xf32>
    %c0_22 = arith.constant 0 : index
    %c0_23 = arith.constant 0 : index
    %21 = vector.load %arg3[%c0_22, %c0_23] : memref<32x48xf32, #tpu.memory_space<vmem>>, vector<32x48xf32>
    %cst_24 = arith.constant dense<0.000000e+00> : vector<8x48xf32>
    %22 = tpu.matmul %19, %21, %cst_24 {dimension_numbers = #tpu.dot_dimension_numbers<[1], [0], [0], [1], [0, 0, 1, 1], [], []>} : vector<8x32xf32>, vector<32x48xf32>, vector<8x48xf32> -> vector<8x48xf32>
    %23 = arith.addf %20, %22 : vector<8x48xf32>
    %c16_25 = arith.constant 16 : index
    %c0_26 = arith.constant 0 : index
    %24 = vector.load %arg9[%c16_25, %c0_26] : memref<64x48xf32, #tpu.memory_space<vmem>>, vector<8x48xf32>
    tpu.vector_store %arg9[%c16_25, %c0_26], %23 {strides = array<i32>} : memref<64x48xf32, #tpu.memory_space<vmem>>, vector<8x48xf32>,
    %25 = vector.extract_strided_slice %23 {offsets = [0, 0], sizes = [8, 32], strides = [1, 1]} : vector<8x48xf32> to vector<8x32xf32>
    %c24 = arith.constant 24 : index
    %c0_27 = arith.constant 0 : index
    %26 = vector.load %arg9[%c24, %c0_27] : memref<64x48xf32, #tpu.memory_space<vmem>>, vector<8x48xf32>
    %c0_28 = arith.constant 0 : index
    %c0_29 = arith.constant 0 : index
    %27 = vector.load %arg3[%c0_28, %c0_29] : memref<32x48xf32, #tpu.memory_space<vmem>>, vector<32x48xf32>
    %cst_30 = arith.constant dense<0.000000e+00> : vector<8x48xf32>
    %28 = tpu.matmul %25, %27, %cst_30 {dimension_numbers = #tpu.dot_dimension_numbers<[1], [0], [0], [1], [0, 0, 1, 1], [], []>} : vector<8x32xf32>, vector<32x48xf32>, vector<8x48xf32> -> vector<8x48xf32>
    %29 = arith.addf %26, %28 : vector<8x48xf32>
    %c24_31 = arith.constant 24 : index
    %c0_32 = arith.constant 0 : index
    %30 = vector.load %arg9[%c24_31, %c0_32] : memref<64x48xf32, #tpu.memory_space<vmem>>, vector<8x48xf32>
    tpu.vector_store %arg9[%c24_31, %c0_32], %29 {strides = array<i32>} : memref<64x48xf32, #tpu.memory_space<vmem>>, vector<8x48xf32>,
    %31 = vector.extract_strided_slice %29 {offsets = [0, 0], sizes = [8, 32], strides = [1, 1]} : vector<8x48xf32> to vector<8x32xf32>
    %c32 = arith.constant 32 : index
    %c0_33 = arith.constant 0 : index
    %32 = vector.load %arg9[%c32, %c0_33] : memref<64x48xf32, #tpu.memory_space<vmem>>, vector<8x48xf32>
    %c0_34 = arith.constant 0 : index
    %c0_35 = arith.constant 0 : index
    %33 = vector.load %arg3[%c0_34, %c0_35] : memref<32x48xf32, #tpu.memory_space<vmem>>, vector<32x48xf32>
    %cst_36 = arith.constant dense<0.000000e+00> : vector<8x48xf32>
    %34 = tpu.matmul %31, %33, %cst_36 {dimension_numbers = #tpu.dot_dimension_numbers<[1], [0], [0], [1], [0, 0, 1, 1], [], []>} : vector<8x32xf32>, vector<32x48xf32>, vector<8x48xf32> -> vector<8x48xf32>
    %35 = arith.addf %32, %34 : vector<8x48xf32>
    %c32_37 = arith.constant 32 : index
    %c0_38 = arith.constant 0 : index
    %36 = vector.load %arg9[%c32_37, %c0_38] : memref<64x48xf32, #tpu.memory_space<vmem>>, vector<8x48xf32>
    tpu.vector_store %arg9[%c32_37, %c0_38], %35 {strides = array<i32>} : memref<64x48xf32, #tpu.memory_space<vmem>>, vector<8x48xf32>,
    %37 = vector.extract_strided_slice %35 {offsets = [0, 0], sizes = [8, 32], strides = [1, 1]} : vector<8x48xf32> to vector<8x32xf32>
    %c40 = arith.constant 40 : index
    %c0_39 = arith.constant 0 : index
    %38 = vector.load %arg9[%c40, %c0_39] : memref<64x48xf32, #tpu.memory_space<vmem>>, vector<8x48xf32>
    %c0_40 = arith.constant 0 : index
    %c0_41 = arith.constant 0 : index
    %39 = vector.load %arg3[%c0_40, %c0_41] : memref<32x48xf32, #tpu.memory_space<vmem>>, vector<32x48xf32>
    %cst_42 = arith.constant dense<0.000000e+00> : vector<8x48xf32>
    %40 = tpu.matmul %37, %39, %cst_42 {dimension_numbers = #tpu.dot_dimension_numbers<[1], [0], [0], [1], [0, 0, 1, 1], [], []>} : vector<8x32xf32>, vector<32x48xf32>, vector<8x48xf32> -> vector<8x48xf32>
    %41 = arith.addf %38, %40 : vector<8x48xf32>
    %c40_43 = arith.constant 40 : index
    %c0_44 = arith.constant 0 : index
    %42 = vector.load %arg9[%c40_43, %c0_44] : memref<64x48xf32, #tpu.memory_space<vmem>>, vector<8x48xf32>
    tpu.vector_store %arg9[%c40_43, %c0_44], %41 {strides = array<i32>} : memref<64x48xf32, #tpu.memory_space<vmem>>, vector<8x48xf32>,
    %43 = vector.extract_strided_slice %41 {offsets = [0, 0], sizes = [8, 32], strides = [1, 1]} : vector<8x48xf32> to vector<8x32xf32>
    %c48 = arith.constant 48 : index
    %c0_45 = arith.constant 0 : index
    %44 = vector.load %arg9[%c48, %c0_45] : memref<64x48xf32, #tpu.memory_space<vmem>>, vector<8x48xf32>
    %c0_46 = arith.constant 0 : index
    %c0_47 = arith.constant 0 : index
    %45 = vector.load %arg3[%c0_46, %c0_47] : memref<32x48xf32, #tpu.memory_space<vmem>>, vector<32x48xf32>
    %cst_48 = arith.constant dense<0.000000e+00> : vector<8x48xf32>
    %46 = tpu.matmul %43, %45, %cst_48 {dimension_numbers = #tpu.dot_dimension_numbers<[1], [0], [0], [1], [0, 0, 1, 1], [], []>} : vector<8x32xf32>, vector<32x48xf32>, vector<8x48xf32> -> vector<8x48xf32>
    %47 = arith.addf %44, %46 : vector<8x48xf32>
    %c48_49 = arith.constant 48 : index
    %c0_50 = arith.constant 0 : index
    %48 = vector.load %arg9[%c48_49, %c0_50] : memref<64x48xf32, #tpu.memory_space<vmem>>, vector<8x48xf32>
    tpu.vector_store %arg9[%c48_49, %c0_50], %47 {strides = array<i32>} : memref<64x48xf32, #tpu.memory_space<vmem>>, vector<8x48xf32>,
    %49 = vector.extract_strided_slice %47 {offsets = [0, 0], sizes = [8, 32], strides = [1, 1]} : vector<8x48xf32> to vector<8x32xf32>
    %c56 = arith.constant 56 : index
    %c0_51 = arith.constant 0 : index
    %50 = vector.load %arg9[%c56, %c0_51] : memref<64x48xf32, #tpu.memory_space<vmem>>, vector<8x48xf32>
    %c0_52 = arith.constant 0 : index
    %c0_53 = arith.constant 0 : index
    %51 = vector.load %arg3[%c0_52, %c0_53] : memref<32x48xf32, #tpu.memory_space<vmem>>, vector<32x48xf32>
    %cst_54 = arith.constant dense<0.000000e+00> : vector<8x48xf32>
    %52 = tpu.matmul %49, %51, %cst_54 {dimension_numbers = #tpu.dot_dimension_numbers<[1], [0], [0], [1], [0, 0, 1, 1], [], []>} : vector<8x32xf32>, vector<32x48xf32>, vector<8x48xf32> -> vector<8x48xf32>
    %53 = arith.addf %50, %52 : vector<8x48xf32>
    %c56_55 = arith.constant 56 : index
    %c0_56 = arith.constant 0 : index
    %54 = vector.load %arg9[%c56_55, %c0_56] : memref<64x48xf32, #tpu.memory_space<vmem>>, vector<8x48xf32>
    tpu.vector_store %arg9[%c56_55, %c0_56], %53 {strides = array<i32>} : memref<64x48xf32, #tpu.memory_space<vmem>>, vector<8x48xf32>,
    %55 = vector.extract_strided_slice %53 {offsets = [0, 0], sizes = [8, 32], strides = [1, 1]} : vector<8x48xf32> to vector<8x32xf32>
    %c0_57 = arith.constant 0 : index
    %c0_58 = arith.constant 0 : index
    %56 = vector.load %arg8[%c0_57, %c0_58] : memref<8x32xf32, #tpu.memory_space<vmem>>, vector<8x32xf32>
    tpu.vector_store %arg8[%c0_57, %c0_58], %55 {strides = array<i32>} : memref<8x32xf32, #tpu.memory_space<vmem>>, vector<8x32xf32>,
    %c0_59 = arith.constant 0 : index
    %c0_60 = arith.constant 0 : index
    %57 = vector.load %arg9[%c0_59, %c0_60] : memref<64x48xf32, #tpu.memory_space<vmem>>, vector<64x48xf32>
    %c0_61 = arith.constant 0 : index
    %c0_62 = arith.constant 0 : index
    %58 = vector.load %arg5[%c0_61, %c0_62] : memref<48x128xf32, #tpu.memory_space<vmem>>, vector<48x128xf32>
    %cst_63 = arith.constant dense<0.000000e+00> : vector<64x128xf32>
    %59 = tpu.matmul %57, %58, %cst_63 {dimension_numbers = #tpu.dot_dimension_numbers<[1], [0], [0], [1], [0, 0, 1, 1], [], []>} : vector<64x48xf32>, vector<48x128xf32>, vector<64x128xf32> -> vector<64x128xf32>
    %c0_64 = arith.constant 0 : index
    %c0_65 = arith.constant 0 : index
    %60 = vector.load %arg6[%c0_64, %c0_65] : memref<1x128xf32, #tpu.memory_space<vmem>>, vector<1x128xf32>
    %61 = vector.broadcast %60 : vector<1x128xf32> to vector<64x128xf32>
    %62 = arith.addf %59, %61 : vector<64x128xf32>
    %cst_66 = arith.constant dense<0xFF800000> : vector<64xf32>
    %63 = vector.multi_reduction <maximumf>, %62, %cst_66 [1] : vector<64x128xf32> to vector<64xf32>
    %64 = vector.shape_cast %63 : vector<64xf32> to vector<64x1xf32>
    %65 = vector.broadcast %64 : vector<64x1xf32> to vector<64x128xf32>
    %66 = arith.subf %62, %65 : vector<64x128xf32>
    %67 = math.exp %66 : vector<64x128xf32>
    %cst_67 = arith.constant dense<0.000000e+00> : vector<64xf32>
    %68 = vector.multi_reduction <add>, %67, %cst_67 [1] : vector<64x128xf32> to vector<64xf32>
    %69 = vector.shape_cast %68 : vector<64xf32> to vector<64x1xf32>
    %70 = math.log %69 : vector<64x1xf32>
    %71 = vector.broadcast %70 : vector<64x1xf32> to vector<64x128xf32>
    %72 = arith.subf %66, %71 : vector<64x128xf32>
    %c0_68 = arith.constant 0 : index
    %c0_69 = arith.constant 0 : index
    %73 = vector.load %arg7[%c0_68, %c0_69] : memref<64x128xf32, #tpu.memory_space<vmem>>, vector<64x128xf32>
    tpu.vector_store %arg7[%c0_68, %c0_69], %72 {strides = array<i32>} : memref<64x128xf32, #tpu.memory_space<vmem>>, vector<64x128xf32>,
    return
  }
  func.func @transform_0(%arg0: i32) -> (i32, i32) {
    %c0_i32 = arith.constant 0 : i32
    %c0_i32_0 = arith.constant 0 : i32
    %c0_i32_1 = arith.constant 0 : i32
    return %c0_i32, %c0_i32_0 : i32, i32
  }
  func.func @transform_1(%arg0: i32) -> (i32, i32) {
    %c0_i32 = arith.constant 0 : i32
    %c0_i32_0 = arith.constant 0 : i32
    %c0_i32_1 = arith.constant 0 : i32
    return %c0_i32, %c0_i32_0 : i32, i32
  }
  func.func @transform_2(%arg0: i32) -> (i32, i32) {
    %c0_i32 = arith.constant 0 : i32
    %c0_i32_0 = arith.constant 0 : i32
    %c0_i32_1 = arith.constant 0 : i32
    return %c0_i32, %c0_i32_0 : i32, i32
  }
  func.func @transform_3(%arg0: i32) -> (i32, i32) {
    %c0_i32 = arith.constant 0 : i32
    %c0_i32_0 = arith.constant 0 : i32
    %c0_i32_1 = arith.constant 0 : i32
    return %c0_i32, %c0_i32_0 : i32, i32
  }
  func.func @transform_4(%arg0: i32) -> (i32, i32) {
    %c0_i32 = arith.constant 0 : i32
    %c0_i32_0 = arith.constant 0 : i32
    %c0_i32_1 = arith.constant 0 : i32
    return %c0_i32, %c0_i32_0 : i32, i32
  }
  func.func @transform_5(%arg0: i32) -> (i32, i32) {
    %c0_i32 = arith.constant 0 : i32
    %c0_i32_0 = arith.constant 0 : i32
    %c0_i32_1 = arith.constant 0 : i32
    return %c0_i32, %c0_i32_0 : i32, i32
  }
  func.func @transform_6(%arg0: i32) -> (i32, i32) {
    %c0_i32 = arith.constant 0 : i32
    %c0_i32_0 = arith.constant 0 : i32
    %c0_i32_1 = arith.constant 0 : i32
    return %c0_i32, %c0_i32_0 : i32, i32
  }
  func.func @transform_7(%arg0: i32) -> (i32, i32) {
    %c0_i32 = arith.constant 0 : i32
    %c0_i32_0 = arith.constant 0 : i32
    %c0_i32_1 = arith.constant 0 : i32
    return %c0_i32, %c0_i32_0 : i32, i32
  }
}

</mosaic_0001>

<bundles_post_ra>
// kernel: tpu_custom_call.1
= control target key start
LH: loop header
LB: loop body
LE: loop exit
PB: predicated region body
PF: predicated region fallthrough
CT: control target
= control target key end

     0   :  { %13 = vsyncpa [#allocation4], 0  ;;  %s1713_s0 = inlined_call_operand.vmem [shape: f32[64,16], index: 0, kind: input, shape index: {}]   ;;  %s1714_s1 = inlined_call_operand.hbm [shape: f32[16,48], index: 1, kind: input, shape index: {}]   ;;  %s1715_s2 = inlined_call_operand.vmem [shape: f32[32,48], index: 2, kind: input, shape index: {}]   ;;  %s1716_s3 = inlined_call_operand.vmem [shape: f32[1,48], index: 3, kind: input, shape index: {}]   ;;  %s1717_s4 = inlined_call_operand.vmem [shape: f32[48,128], index: 4, kind: input, shape index: {}]   ;;  %s1718_s5 = inlined_call_operand.vmem [shape: f32[1,128], index: 5, kind: input, shape index: {}]   ;;  %s1719_s6 = inlined_call_operand.hbm [shape: f32[64,128], index: 6, kind: output, shape index: {0}]   ;;  %s1720_s7 = inlined_call_operand.hbm [shape: f32[8,32], index: 7, kind: output, shape index: {1}]  }
   0x1   :  { %14 = vsyncpa [#allocation5], 0 }
   0x2   :  { %15 = vsyncpa [#allocation8], 0  ;;  %s1430_s24 = smov [#allocation3]  }
   0x3   :  { %s23_s25 = sshll.u32 %s1430_s24, 4  ;;  %s24_s25 = int_to_ptr.vmem [resolvable:$true] %s23_s25 }
   0x4   :  { %s1372_s26 = scalar_lea.vmem %s24_s25, 256  ;;  %p1377_p1 = scmp.lt.s32.totalorder %s24_s25, %s24_s25 }
   0x5   :  { %p1373_p0 = scmp.ne.s32.totalorder %s24_s25, %s1372_s26  ;;  %p1378_p2 = scmp.lt.s32.totalorder %s1372_s26, %s1372_s26 }
   0x7   :  { %p1379_p3 = por %p1378_p2, %p1377_p1 }
   0x9   :  { %p1380_p4 = pnand %p1379_p3, %p1373_p0 }
   0xb   :  { %1383 = shalt.err (!%p1380_p4)
}
   0xc   :  { %s1431_s27 = smov 128   ;;  %s1432_s28 = smov 8  }
   0xd   :  { %29 = dma.hbm_to_vmem [thread:$0]  %s1714_s1, 256, %s24_s25, [#allocation4], %s1431_s27, %s1431_s27, %s1432_s28  }
   0xe   :  { %1424 = dma.done.wait [#allocation4], 256  }
   0xf   :  { %1425 = vsyncadd [#allocation4], 4294967040  ;;  %v1433_v0 = vmov 0.0   ;;  %vm1434_vm0 = vmmov 0   ;;  %vm58_vm1 = vcmask 130048   ;;  %v50_v1 = vld [vmem:[#allocation3 + $0x8] sm:$0xff] }
  0x10   :  { %1235 = vmatprep.subr.mxu0 %v1433_v0  ;;  %1243 = vmatprep.mubr.msk.f32.mxu0 %vm1434_vm0, %v1433_v0  ;;  %v49_v2 = vld [vmem:[#allocation3] sm:$0xff]  ;;  %v1493_v4 = vld [vmem:[%s1715_s2 + $0x18] sm:$0xff]  ;;  %v42_v5 = vld [vmem:[%s1713_s0 + $0x8] sm:$0xff]  ;;  %vm188_vm2 = vcmask 392192   ;;  %vm202_vm3 = vcmask 261120  }
  0x11   :  { %v41_v3 = vld [vmem:[%s1713_s0] sm:$0xff]  ;;  %1197 = vmatprep.subr.mxu1 %v50_v1  ;;  %1236 = vmatpush3.msra.mxu0 %v1493_v4  ;;  %v43_v6 = vld [vmem:[%s1713_s0 + $0x10] sm:$0xff]  ;;  %v44_v8 = vld [vmem:[%s1713_s0 + $0x18] sm:$0xff] }
  0x12   :  { %1201 = vmatprep.mubr.msk.f32.mxu1 %vm58_vm1, %v41_v3  ;;  %1198 = vmatpush3.msra.mxu1 %v50_v1  ;;  %v1505_v7 = vld [vmem:[%s1715_s2 + $0x10] sm:$0xff]  ;;  %v45_v9 = vld [vmem:[%s1713_s0 + $0x20] sm:$0xff]  ;;  %v1523_v10 = vld [vmem:[%s1715_s2 + $0x8] sm:$0xff] }
  0x13   :  { %1199 = vmatprep.subr.mxu1 %v49_v2  ;;  %1237 = vmatprep.subr.mxu0 %v1433_v0  ;;  %v1533_v11 = vld [vmem:[%s1715_s2] sm:$0xff]  ;;  %v46_v12 = vld [vmem:[%s1713_s0 + $0x28] sm:$0xff]  ;;  %v47_v13 = vld [vmem:[%s1713_s0 + $0x30] sm:$0xff] }
  0x14   :  { %1200 = vmatpush3.msra.mxu1 %v49_v2  ;;  %1238 = vmatpush3.msra.mxu0 %v1505_v7  ;;  %v48_v14 = vld [vmem:[%s1713_s0 + $0x38] sm:$0xff]  ;;  %v1108_v15 = vld [vmem:[%s1716_s3] ss:$0 sm:$0xff]  ;;  %v852_v52 = vld [vmem:[%s1717_s4 + $0x28] sm:$0xff] }
  0x15   :  { %1202 = vmatmul.mubr.msk.f32.vlgmr.msra.gmra.mxu1 %vm58_vm1, %v42_v5  ;;  %1213 = vmatprep.subr.mxu1 %v1433_v0  ;;  %v851_v57 = vld [vmem:[%s1717_s4 + $0x20] sm:$0xff]  ;;  %v850_v59 = vld [vmem:[%s1717_s4 + $0x18] sm:$0xff]  ;;  %v849_v60 = vld [vmem:[%s1717_s4 + $0x10] sm:$0xff] }
  0x16   :  { %1214 = vmatpush3.msra.mxu1 %v1493_v4  ;;  %1204 = vmatprep.mubr.msk.f32.mxu1 %vm58_vm1, %v43_v6  ;;  %v848_v61 = vld [vmem:[%s1717_s4 + $0x8] sm:$0xff]  ;;  %v847_v62 = vld [vmem:[%s1717_s4] sm:$0xff] }
  0x17   :  { %1215 = vmatprep.subr.mxu1 %v1433_v0  ;;  %1239 = vmatprep.subr.mxu0 %v1433_v0 }
  0x18   :  { %1216 = vmatpush3.msra.mxu1 %v1505_v7  ;;  %1240 = vmatpush3.msra.mxu0 %v1523_v10 }
  0x19   :  { %1205 = vmatmul.mubr.msk.f32.gmra.mxu1 %vm58_vm1, %v44_v8  ;;  %1217 = vmatprep.subr.mxu1 %v1433_v0  ;;  %v1124_v8 = vld [vmem:[%s1718_s5] ss:$0 sm:$0xff]  ;;  %s1435_s5 = smov [#allocation7]  }
  0x1a   :  { %1207 = vmatprep.mubr.msk.f32.mxu1 %vm58_vm1, %v45_v9  ;;  %1218 = vmatpush3.msra.mxu1 %v1523_v10  ;;  %s1095_s21 = sshll.u32 %s1435_s5, 4  ;;  %s1096_s21 = int_to_ptr.vmem [resolvable:$true] %s1095_s21 }
  0x1b   :  { %1219 = vmatprep.subr.mxu1 %v1433_v0  ;;  %1241 = vmatprep.subr.mxu0 %v1433_v0  ;;  %s1384_s22 = scalar_lea.vmem %s1096_s21, 128  ;;  %p1389_p6 = scmp.lt.s32.totalorder %s1096_s21, %s1096_s21 }
  0x1c   :  { %1220 = vmatpush3.msra.mxu1 %v1533_v11  ;;  %1242 = vmatpush3.msra.mxu0 %v1533_v11  ;;  %p1385_p5 = scmp.ne.s32.totalorder %s1096_s21, %s1384_s22  ;;  %p1390_p7 = scmp.lt.s32.totalorder %s1384_s22, %s1384_s22 }
  0x1d   :  { %1208 = vmatmul.mubr.msk.f32.gmra.mxu1 %vm58_vm1, %v46_v12  ;;  %1224 = vmatprep.subr.mxu1 %v1433_v0 }
  0x1e   :  { %1210 = vmatprep.mubr.msk.f32.mxu1 %vm58_vm1, %v47_v13  ;;  %1257 = vmatprep.subr.mxu0 %v1433_v0  ;;  %p1391_p8 = por %p1390_p7, %p1389_p6 }
  0x20   :  { %p1392_p9 = pnand %p1391_p8, %p1385_p5 }
  0x21   :  { %1211 = vmatmul.mubr.msk.f32.gmra.mxu1 %vm58_vm1, %v48_v14 }
  0x22   :  { %1221 = vmatprep.mubr.msk.f32.mxu1 %vm1434_vm0, %v1433_v0 }
  0x25   :  { %1222 = vmatmul.mubr.f32.vlgmr.msra.gmra.mxu1 %v1433_v0 }
  0x26   :  { %1225 = vmatpush3.msra.mxu1 %v1493_v4  ;;  %1232 = vmatprep.mubr.msk.f32.mxu1 %vm1434_vm0, %v1433_v0 }
  0x27   :  { %1226 = vmatprep.subr.mxu1 %v1433_v0 }
  0x28   :  { %1227 = vmatpush3.msra.mxu1 %v1505_v7 }
  0x29   :  { %1228 = vmatprep.subr.mxu1 %v1433_v0 }
  0x2a   :  { %1229 = vmatpush3.msra.mxu1 %v1523_v10 }
  0x2b   :  { %1230 = vmatprep.subr.mxu1 %v1433_v0 }
  0x2c   :  { %1231 = vmatpush3.msra.mxu1 %v1533_v11 }
  0x2d   :  { %1246 = vmatprep.subr.mxu1 %v1433_v0 }
  0xd5   :  { %v1203_v16 = vpop.f32.mrf.mxu1 }
  0xd6   :  { %v155_v17 = vadd.f32 %v1203_v16, %v1108_v15 }
  0xd7   :  { %v149_v18 = vpop.f32.mrf.mxu1 }
  0xd8   :  { %190 = vst.msk [vmem:[#allocation2 + $0x8] sm:$0xff] %vm188_vm2, %v155_v17  ;;  %v150_v19 = vadd.f32 %v1108_v15, %v149_v18 }
  0xd9   :  { %v1206_v20 = vpop.f32.mrf.mxu1 }
  0xda   :  { %189 = vst.msk [vmem:[#allocation2] sm:$0xff] %vm188_vm2, %v150_v19  ;;  %v165_v21 = vadd.f32 %v1206_v20, %v1108_v15 }
  0xdb   :  { %v159_v22 = vpop.f32.mrf.mxu1 }
  0xdc   :  { %192 = vst.msk [vmem:[#allocation2 + $0x18] sm:$0xff] %vm188_vm2, %v165_v21  ;;  %v160_v23 = vadd.f32 %v1108_v15, %v159_v22 }
  0xdd   :  { %v1209_v24 = vpop.f32.mrf.mxu1 }
  0xde   :  { %191 = vst.msk [vmem:[#allocation2 + $0x10] sm:$0xff] %vm188_vm2, %v160_v23  ;;  %v175_v25 = vadd.f32 %v1209_v24, %v1108_v15 }
  0xdf   :  { %v169_v26 = vpop.f32.mrf.mxu1  ;;  %v278_v36 = vld [vmem:[#allocation2 + $0x8] sm:$0xff] }
  0xe0   :  { %194 = vst.msk [vmem:[#allocation2 + $0x28] sm:$0xff] %vm188_vm2, %v175_v25  ;;  %v170_v27 = vadd.f32 %v1108_v15, %v169_v26 }
  0xe1   :  { %v1212_v28 = vpop.f32.mrf.mxu1  ;;  %v197_v32 = vld [vmem:[#allocation2] sm:$0xff] }
  0xe2   :  { %193 = vst.msk [vmem:[#allocation2 + $0x20] sm:$0xff] %vm188_vm2, %v170_v27  ;;  %v185_v29 = vadd.f32 %v1212_v28, %v1108_v15 }
  0xe3   :  { %v179_v30 = vpop.f32.mrf.mxu1  ;;  %v438_v44 = vld [vmem:[#allocation2 + $0x18] sm:$0xff] }
  0xe4   :  { %196 = vst.msk [vmem:[#allocation2 + $0x38] sm:$0xff] %vm188_vm2, %v185_v29  ;;  %v180_v31 = vadd.f32 %v1108_v15, %v179_v30 }
  0xe5   :  { %v272_v33 = vpop.f32.mrf.mxu1  ;;  %v358_v40 = vld [vmem:[#allocation2 + $0x10] sm:$0xff] }
  0xe6   :  { %195 = vst.msk [vmem:[#allocation2 + $0x30] sm:$0xff] %vm188_vm2, %v180_v31  ;;  %v276_v34 = vadd.f32 %v272_v33, %v197_v32 }
  0xe7   :  { %v1223_v35 = vpop.f32.mrf.mxu1  ;;  %v598_v53 = vld [vmem:[#allocation2 + $0x28] sm:$0xff] }
  0xe8   :  { %277 = vst.msk [vmem:[#allocation2] sm:$0xff] %vm188_vm2, %v276_v34  ;;  %1233 = vmatmul.mubr.msk.f32.vlgmr.msra.gmra.mxu1 %vm202_vm3, %v276_v34 }
  0xe9   :  { %1247 = vmatpush3.msra.mxu1 %v1493_v4  ;;  %1254 = vmatprep.mubr.msk.f32.mxu1 %vm1434_vm0, %v1433_v0  ;;  %v518_v48 = vld [vmem:[#allocation2 + $0x20] sm:$0xff] }
  0xea   :  { %1248 = vmatprep.subr.mxu1 %v1433_v0 }
  0xeb   :  { %1249 = vmatpush3.msra.mxu1 %v1505_v7  ;;  %v758_v22 = vld [vmem:[#allocation2 + $0x38] sm:$0xff] }
  0xec   :  { %1250 = vmatprep.subr.mxu1 %v1433_v0 }
  0xed   :  { %1251 = vmatpush3.msra.mxu1 %v1523_v10 }
  0xee   :  { %1252 = vmatprep.subr.mxu1 %v1433_v0 }
  0xef   :  { %1253 = vmatpush3.msra.mxu1 %v1533_v11  ;;  %v839_v58 = vld [vmem:[#allocation2] sm:$0xff] }
  0xf0   :  { %1268 = vmatprep.subr.mxu1 %v1433_v0 }
 0x1a8   :  { %v352_v37 = vpop.f32.mrf.mxu1 }
 0x1a9   :  { %v356_v38 = vadd.f32 %v352_v37, %v278_v36 }
 0x1aa   :  { %v1234_v39 = vpop.f32.mrf.mxu1 }
 0x1ab   :  { %357 = vst.msk [vmem:[#allocation2 + $0x8] sm:$0xff] %vm188_vm2, %v356_v38  ;;  %1244 = vmatmul.mubr.msk.f32.vlgmr.msra.gmra.mxu0 %vm202_vm3, %v356_v38 }
 0x1ac   :  { %1258 = vmatpush3.msra.mxu0 %v1493_v4  ;;  %1265 = vmatprep.mubr.msk.f32.mxu0 %vm1434_vm0, %v1433_v0 }
 0x1ad   :  { %1259 = vmatprep.subr.mxu0 %v1433_v0 }
 0x1ae   :  { %1260 = vmatpush3.msra.mxu0 %v1505_v7 }
 0x1af   :  { %1261 = vmatprep.subr.mxu0 %v1433_v0 }
 0x1b0   :  { %1262 = vmatpush3.msra.mxu0 %v1523_v10 }
 0x1b1   :  { %1263 = vmatprep.subr.mxu0 %v1433_v0 }
 0x1b2   :  { %1264 = vmatpush3.msra.mxu0 %v1533_v11  ;;  %v840_v63 = vld [vmem:[#allocation2 + $0x8] sm:$0xff] }
 0x1b3   :  { %1279 = vmatprep.subr.mxu0 %v1433_v0 }
 0x26b   :  { %v432_v41 = vpop.f32.mrf.mxu0 }
 0x26c   :  { %v436_v42 = vadd.f32 %v432_v41, %v358_v40 }
 0x26d   :  { %v1245_v43 = vpop.f32.mrf.mxu0 }
 0x26e   :  { %437 = vst.msk [vmem:[#allocation2 + $0x10] sm:$0xff] %vm188_vm2, %v436_v42  ;;  %1255 = vmatmul.mubr.msk.f32.vlgmr.msra.gmra.mxu1 %vm202_vm3, %v436_v42 }
 0x26f   :  { %1269 = vmatpush3.msra.mxu1 %v1493_v4  ;;  %1276 = vmatprep.mubr.msk.f32.mxu1 %vm1434_vm0, %v1433_v0 }
 0x270   :  { %1270 = vmatprep.subr.mxu1 %v1433_v0 }
 0x271   :  { %1271 = vmatpush3.msra.mxu1 %v1505_v7 }
 0x272   :  { %1272 = vmatprep.subr.mxu1 %v1433_v0 }
 0x273   :  { %1273 = vmatpush3.msra.mxu1 %v1523_v10 }
 0x274   :  { %1274 = vmatprep.subr.mxu1 %v1433_v0 }
 0x275   :  { %1275 = vmatpush3.msra.mxu1 %v1533_v11 }
 0x276   :  { %1290 = vmatprep.subr.mxu1 %v1433_v0 }
 0x32e   :  { %v512_v45 = vpop.f32.mrf.mxu1 }
 0x32f   :  { %v516_v46 = vadd.f32 %v512_v45, %v438_v44 }
 0x330   :  { %v1256_v47 = vpop.f32.mrf.mxu1 }
 0x331   :  { %517 = vst.msk [vmem:[#allocation2 + $0x18] sm:$0xff] %vm188_vm2, %v516_v46  ;;  %1266 = vmatmul.mubr.msk.f32.vlgmr.msra.gmra.mxu0 %vm202_vm3, %v516_v46 }
 0x332   :  { %1280 = vmatpush3.msra.mxu0 %v1493_v4  ;;  %1287 = vmatprep.mubr.msk.f32.mxu0 %vm1434_vm0, %v1433_v0 }
 0x333   :  { %1281 = vmatprep.subr.mxu0 %v1433_v0 }
 0x334   :  { %1282 = vmatpush3.msra.mxu0 %v1505_v7 }
 0x335   :  { %1283 = vmatprep.subr.mxu0 %v1433_v0 }
 0x336   :  { %1284 = vmatpush3.msra.mxu0 %v1523_v10 }
 0x337   :  { %1285 = vmatprep.subr.mxu0 %v1433_v0 }
 0x338   :  { %1286 = vmatpush3.msra.mxu0 %v1533_v11  ;;  %v842_v1 = vld [vmem:[#allocation2 + $0x18] sm:$0xff] }
 0x339   :  { %1301 = vmatprep.subr.mxu0 %v852_v52 }
 0x3f1   :  { %v592_v49 = vpop.f32.mrf.mxu0 }
 0x3f2   :  { %v596_v50 = vadd.f32 %v592_v49, %v518_v48 }
 0x3f3   :  { %v1267_v51 = vpop.f32.mrf.mxu0 }
 0x3f4   :  { %597 = vst.msk [vmem:[#allocation2 + $0x20] sm:$0xff] %vm188_vm2, %v596_v50  ;;  %1277 = vmatmul.mubr.msk.f32.vlgmr.msra.gmra.mxu1 %vm202_vm3, %v596_v50 }
 0x3f5   :  { %1291 = vmatpush3.msra.mxu1 %v1493_v4  ;;  %1298 = vmatprep.mubr.msk.f32.mxu1 %vm1434_vm0, %v1433_v0  ;;  %v678_v4 = vld [vmem:[#allocation2 + $0x30] sm:$0xff] }
 0x3f6   :  { %1292 = vmatprep.subr.mxu1 %v1433_v0 }
 0x3f7   :  { %1293 = vmatpush3.msra.mxu1 %v1505_v7 }
 0x3f8   :  { %1294 = vmatprep.subr.mxu1 %v1433_v0 }
 0x3f9   :  { %1295 = vmatpush3.msra.mxu1 %v1523_v10 }
 0x3fa   :  { %1296 = vmatprep.subr.mxu1 %v1433_v0  ;;  %v841_v0 = vld [vmem:[#allocation2 + $0x10] sm:$0xff] }
 0x3fb   :  { %1297 = vmatpush3.msra.mxu1 %v1533_v11  ;;  %v843_v2 = vld [vmem:[#allocation2 + $0x20] sm:$0xff] }
 0x4b4   :  { %v672_v54 = vpop.f32.mrf.mxu1 }
 0x4b5   :  { %v676_v55 = vadd.f32 %v672_v54, %v598_v53 }
 0x4b6   :  { %v1278_v56 = vpop.f32.mrf.mxu1 }
 0x4b7   :  { %677 = vst.msk [vmem:[#allocation2 + $0x28] sm:$0xff] %vm188_vm2, %v676_v55  ;;  %1288 = vmatmul.mubr.msk.f32.vlgmr.msra.gmra.mxu0 %vm202_vm3, %v676_v55 }
 0x4b8   :  { %1302 = vmatpush3.msra.mxu0 %v852_v52  ;;  %1313 = vmatprep.mubr.msk.f32.mxu0 %vm188_vm2, %v839_v58 }
 0x4b9   :  { %1303 = vmatprep.subr.mxu0 %v851_v57 }
 0x4ba   :  { %1304 = vmatpush3.msra.mxu0 %v851_v57 }
 0x4bb   :  { %1305 = vmatprep.subr.mxu0 %v850_v59 }
 0x4bc   :  { %1306 = vmatpush3.msra.mxu0 %v850_v59 }
 0x4bd   :  { %1307 = vmatprep.subr.mxu0 %v849_v60 }
 0x4be   :  { %1308 = vmatpush3.msra.mxu0 %v849_v60  ;;  %v844_v3 = vld [vmem:[#allocation2 + $0x28] sm:$0xff] }
 0x4bf   :  { %1309 = vmatprep.subr.mxu0 %v848_v61 }
 0x4c0   :  { %1310 = vmatpush3.msra.mxu0 %v848_v61 }
 0x4c1   :  { %1311 = vmatprep.subr.mxu0 %v847_v62 }
 0x4c2   :  { %1312 = vmatpush3.msra.mxu0 %v847_v62 }
 0x4c3   :  { %1314 = vmatmul.mubr.msk.f32.vlgmr.msra.gmra.mxu0 %vm188_vm2, %v840_v63 }
 0x4c4   :  { %1316 = vmatprep.mubr.msk.f32.mxu0 %vm188_vm2, %v841_v0 }
 0x4c7   :  { %1317 = vmatmul.mubr.msk.f32.gmra.mxu0 %vm188_vm2, %v842_v1 }
 0x4c8   :  { %1319 = vmatprep.mubr.msk.f32.mxu0 %vm188_vm2, %v843_v2 }
 0x4cb   :  { %1320 = vmatmul.mubr.msk.f32.gmra.mxu0 %vm188_vm2, %v844_v3 }
 0x577   :  { %v752_v5 = vpop.f32.mrf.mxu0 }
 0x578   :  { %v756_v6 = vadd.f32 %v752_v5, %v678_v4 }
 0x579   :  { %v1289_v7 = vpop.f32.mrf.mxu0 }
 0x57a   :  { %757 = vst.msk [vmem:[#allocation2 + $0x30] sm:$0xff] %vm188_vm2, %v756_v6  ;;  %1299 = vmatmul.mubr.msk.f32.vlgmr.msra.gmra.mxu1 %vm202_vm3, %v756_v6 }
 0x581   :  { %v845_v9 = vld [vmem:[#allocation2 + $0x30] sm:$0xff] }
 0x582   :  { %1322 = vmatprep.mubr.msk.f32.mxu0 %vm188_vm2, %v845_v9 }
 0x583   :  { %v1315_v10 = vpop.f32.mrf.mxu0 }
 0x584   :  { %v956_v11 = vadd.f32 %v1315_v10, %v1124_v8 }
 0x585   :  { %v950_v12 = vpop.f32.mrf.mxu0 }
 0x586   :  { %991 = vmax.xlane.f32.xlu0 %v956_v11  ;;  %v951_v14 = vadd.f32 %v1124_v8, %v950_v12 }
 0x587   :  { %v1318_v13 = vpop.f32.mrf.mxu0 }
 0x588   :  { %v966_v15 = vadd.f32 %v1318_v13, %v1124_v8 }
 0x589   :  { %v960_v16 = vpop.f32.mrf.mxu0 }
 0x58a   :  { %995 = vmax.xlane.f32.xlu1 %v966_v15  ;;  %989 = vmax.xlane.f32.xlu0 %v951_v14  ;;  %v961_v18 = vadd.f32 %v1124_v8, %v960_v16 }
 0x58b   :  { %v1321_v17 = vpop.f32.mrf.mxu0 }
 0x58c   :  { %v976_v21 = vadd.f32 %v1321_v17, %v1124_v8 }
 0x58d   :  { %v970_v19 = vpop.f32.mrf.mxu0 }
 0x58e   :  { %v971_v20 = vadd.f32 %v1124_v8, %v970_v19  ;;  %993 = vmax.xlane.f32.xlu1 %v961_v18 }
 0x590   :  { %997 = vmax.xlane.f32.xlu0 %v971_v20 }
 0x592   :  { %999 = vmax.xlane.f32.xlu1 %v976_v21 }
 0x60f   :  { %v992_v27 = vpop.xlane.xlu0 %991 }
 0x610   :  { %v1672_v31 = vsub.f32 %v956_v11, %v992_v27 }
 0x612   :  { %v1015_v33 = vmul.f32 1.442695, %v1672_v31 }
 0x613   :  { %v996_v28 = vpop.xlane.xlu1 %995  ;;  %v990_v29 = vpop.xlane.xlu0 %989 }
 0x614   :  { %v1674_v32 = vsub.f32 %v951_v14, %v990_v29  ;;  %v1677_v34 = vsub.f32 %v966_v15, %v996_v28  ;;  %1332 = vpow2.f32 %v1015_v33 }
 0x616   :  { %v1013_v36 = vmul.f32 1.442695, %v1674_v32  ;;  %v1019_v39 = vmul.f32 1.442695, %v1677_v34 }
 0x617   :  { %v994_v30 = vpop.xlane.xlu1 %993 }
 0x618   :  { %v1680_v37 = vsub.f32 %v961_v18, %v994_v30  ;;  %1334 = vpow2.f32 %v1013_v36 }
 0x619   :  { %v998_v38 = vpop.xlane.xlu0 %997  ;;  %1336 = vpow2.f32 %v1019_v39 }
 0x61a   :  { %v1017_v41 = vmul.f32 1.442695, %v1680_v37  ;;  %v1686_v42 = vsub.f32 %v971_v20, %v998_v38 }
 0x61b   :  { %v1000_v35 = vpop.xlane.xlu1 %999 }
 0x61c   :  { %v1683_v40 = vsub.f32 %v976_v21, %v1000_v35  ;;  %1338 = vpow2.f32 %v1017_v41  ;;  %v1021_v44 = vmul.f32 1.442695, %v1686_v42 }
 0x61e   :  { %v1023_v43 = vmul.f32 1.442695, %v1683_v40 }
 0x620   :  { %1340 = vpow2.f32 %v1023_v43 }
 0x621   :  { %1342 = vpow2.f32 %v1021_v44  ;;  %v1333_v49 = vpop.eup %1332 }
 0x625   :  { %v1335_v50 = vpop.eup %1334 }
 0x626   :  { %v1337_v51 = vpop.eup %1336 }
 0x629   :  { %v1339_v52 = vpop.eup %1338 }
 0x62d   :  { %v1341_v53 = vpop.eup %1340 }
 0x62e   :  { %v1343_v54 = vpop.eup %1342 }
 0x63a   :  { %v832_v23 = vpop.f32.mrf.mxu1 }
 0x63b   :  { %v836_v24 = vadd.f32 %v832_v23, %v758_v22 }
 0x63c   :  { %v1300_v25 = vpop.f32.mrf.mxu1 }
 0x63d   :  { %837 = vst.msk [vmem:[#allocation2 + $0x38] sm:$0xff] %vm188_vm2, %v836_v24 }
 0x63e   :  { %838 = vst.msk [vmem:[#allocation7] sm:$0xff] %vm202_vm3, %v836_v24 }
 0x644   :  { %v846_v26 = vld [vmem:[#allocation2 + $0x38] sm:$0xff] }
 0x645   :  { %1323 = vmatmul.mubr.msk.f32.gmra.mxu0 %vm188_vm2, %v846_v26 }
 0x705   :  { %v1324_v45 = vpop.f32.mrf.mxu0 }
 0x706   :  { %v986_v46 = vadd.f32 %v1324_v45, %v1124_v8 }
 0x707   :  { %v980_v47 = vpop.f32.mrf.mxu0 }
 0x708   :  { %v981_v48 = vadd.f32 %v1124_v8, %v980_v47  ;;  %1003 = vmax.xlane.f32.xlu1 %v986_v46 }
 0x70a   :  { %1001 = vmax.xlane.f32.xlu0 %v981_v48 }
 0x70c   :  { %1031 = vadd.xlane.f32.xlu1 %v1333_v49 }
 0x70e   :  { %1029 = vadd.xlane.f32.xlu0 %v1335_v50 }
 0x710   :  { %1035 = vadd.xlane.f32.xlu1 %v1337_v51 }
 0x712   :  { %1033 = vadd.xlane.f32.xlu0 %v1339_v52 }
 0x714   :  { %1039 = vadd.xlane.f32.xlu1 %v1341_v53 }
 0x716   :  { %1037 = vadd.xlane.f32.xlu0 %v1343_v54 }
 0x791   :  { %v1004_v55 = vpop.xlane.xlu1 %1003 }
 0x792   :  { %v1690_v56 = vsub.f32 %v986_v46, %v1004_v55 }
 0x793   :  { %v1002_v57 = vpop.xlane.xlu0 %1001 }
 0x794   :  { %v1027_v58 = vmul.f32 1.442695, %v1690_v56  ;;  %v1693_v59 = vsub.f32 %v981_v48, %v1002_v57 }
 0x795   :  { %v1032_v60 = vpop.xlane.xlu1 %1031 }
 0x796   :  { %1344 = vpow2.f32 %v1027_v58  ;;  %v1025_v61 = vmul.f32 1.442695, %v1693_v59 }
 0x797   :  { %1346 = vlog2.f32 %v1032_v60  ;;  %v1030_v62 = vpop.xlane.xlu0 %1029 }
 0x798   :  { %1348 = vpow2.f32 %v1025_v61 }
 0x799   :  { %1350 = vlog2.f32 %v1030_v62  ;;  %v1036_v63 = vpop.xlane.xlu1 %1035 }
 0x79a   :  { %1352 = vlog2.f32 %v1036_v63 }
 0x79b   :  { %v1034_v0 = vpop.xlane.xlu0 %1033 }
 0x79c   :  { %1354 = vlog2.f32 %v1034_v0 }
 0x79d   :  { %v1040_v1 = vpop.xlane.xlu1 %1039 }
 0x79e   :  { %1356 = vlog2.f32 %v1040_v1 }
 0x79f   :  { %v1038_v2 = vpop.xlane.xlu0 %1037 }
 0x7a0   :  { %1358 = vlog2.f32 %v1038_v2 }
 0x7a3   :  { %v1345_v3 = vpop.eup %1344 }
 0x7a4   :  { %v1347_v4 = vpop.eup %1346  ;;  %1043 = vadd.xlane.f32.xlu1 %v1345_v3 }
 0x7a5   :  { %v1349_v5 = vpop.eup %1348  ;;  %v1048_v6 = vmul.f32 0.6931472, %v1347_v4 }
 0x7a6   :  { %v1351_v7 = vpop.eup %1350  ;;  %1041 = vadd.xlane.f32.xlu0 %v1349_v5 }
 0x7a7   :  { %v1353_v8 = vpop.eup %1352  ;;  %v1062_v9 = vsub.f32 %v1672_v31, %v1048_v6  ;;  %v1046_v10 = vmul.f32 0.6931472, %v1351_v7 }
 0x7a8   :  { %v1052_v11 = vmul.f32 0.6931472, %v1353_v8 }
 0x7a9   :  { %v1355_v12 = vpop.eup %1354  ;;  %1070 = vst [vmem:[#allocation6 + $0x8] sm:$0xff] %v1062_v9  ;;  %v1061_v13 = vsub.f32 %v1674_v32, %v1046_v10 }
 0x7aa   :  { %v1064_v14 = vsub.f32 %v1677_v34, %v1052_v11  ;;  %v1050_v15 = vmul.f32 0.6931472, %v1355_v12 }
 0x7ab   :  { %v1357_v16 = vpop.eup %1356  ;;  %1069 = vst [vmem:[#allocation6] sm:$0xff] %v1061_v13 }
 0x7ac   :  { %1072 = vst [vmem:[#allocation6 + $0x18] sm:$0xff] %v1064_v14  ;;  %v1063_v17 = vsub.f32 %v1680_v37, %v1050_v15  ;;  %v1056_v18 = vmul.f32 0.6931472, %v1357_v16 }
 0x7ad   :  { %v1359_v19 = vpop.eup %1358 }
 0x7ae   :  { %1071 = vst [vmem:[#allocation6 + $0x10] sm:$0xff] %v1063_v17  ;;  %v1066_v20 = vsub.f32 %v1683_v40, %v1056_v18  ;;  %v1054_v21 = vmul.f32 0.6931472, %v1359_v19 }
 0x7b0   :  { %1074 = vst [vmem:[#allocation6 + $0x28] sm:$0xff] %v1066_v20  ;;  %v1065_v22 = vsub.f32 %v1686_v42, %v1054_v21 }
 0x7b2   :  { %1073 = vst [vmem:[#allocation6 + $0x20] sm:$0xff] %v1065_v22 }
 0x7b3   :  { %1395 = shalt.err (!%p1392_p9)
}
 0x7b4   :  { %1098 = dma.vmem_to_hbm [thread:$0]  %s1096_s21, 128, %s1720_s7, [#allocation8]  }
 0x7b5   :  { %s1436_s25 = smov [#allocation6]  }
 0x7b6   :  { %s1082_s26 = sshll.u32 %s1436_s25, 4  ;;  %s1083_s26 = int_to_ptr.vmem [resolvable:$true] %s1082_s26 }
 0x7b7   :  { %s1404_s29 = scalar_lea.vmem %s1083_s26, 1024  ;;  %p1409_p11 = scmp.lt.s32.totalorder %s1083_s26, %s1083_s26 }
 0x7b8   :  { %p1405_p10 = scmp.ne.s32.totalorder %s1083_s26, %s1404_s29  ;;  %p1410_p12 = scmp.lt.s32.totalorder %s1404_s29, %s1404_s29 }
 0x7ba   :  { %p1411_p13 = por %p1410_p12, %p1409_p11 }
 0x7bc   :  { %p1412_p0 = pnand %p1411_p13, %p1405_p10 }
 0x82d   :  { %v1044_v23 = vpop.xlane.xlu1 %1043 }
 0x82e   :  { %1360 = vlog2.f32 %v1044_v23 }
 0x82f   :  { %v1042_v24 = vpop.xlane.xlu0 %1041 }
 0x830   :  { %1362 = vlog2.f32 %v1042_v24 }
 0x83b   :  { %v1361_v25 = vpop.eup %1360 }
 0x83c   :  { %v1060_v26 = vmul.f32 0.6931472, %v1361_v25 }
 0x83d   :  { %v1363_v27 = vpop.eup %1362 }
 0x83e   :  { %v1068_v28 = vsub.f32 %v1690_v56, %v1060_v26  ;;  %v1058_v29 = vmul.f32 0.6931472, %v1363_v27 }
 0x840   :  { %1076 = vst [vmem:[#allocation6 + $0x38] sm:$0xff] %v1068_v28  ;;  %v1067_v30 = vsub.f32 %v1693_v59, %v1058_v29 }
 0x842   :  { %1075 = vst [vmem:[#allocation6 + $0x30] sm:$0xff] %v1067_v30 }
 0x843   :  { %1415 = shalt.err (!%p1412_p0)
}
 0x844   :  { %1088 = dma.vmem_to_hbm [thread:$0]  %s1083_s26, 1024, %s1719_s6, [#allocation5], %s1431_s27, %s1431_s27, %s1432_s28  }
 0x845   :  { %1426 = dma.done.wait [#allocation5], 1024  }
 0x846   :  { %1427 = vsyncadd [#allocation5], 4294966272 }
 0x847   :  { %1428 = dma.done.wait [#allocation8], 128  }
 0x848   :  { %1429 = vsyncadd [#allocation8], 4294967168 }
 0x849   :  { %1105 = vsyncpa [#allocation4], 1 }
 0x84a   :  { %1106 = vsyncpa [#allocation5], 1 }
 0x84b   :  { %1107 = vsyncpa [#allocation8], 1 }

</bundles_post_ra>
